<compile_context>
chip_gen: v7x
topology: tpu7x:2x2x1
jax: 0.10.0
libtpu: 0.0.40
codegen_flags: <defaults>
</compile_context>

<pallas_src>
import functools
import math

import jax
import jax.numpy as jnp
from jax.experimental import pallas as pl
from jax.experimental.pallas import tpu as pltpu

# Acrobot-v1 dimensions (env is not available here; these are its fixed sizes).
N_OBS = 6
N_ACT = 3
HIDDEN = 128
PACK_W = 128           # lane-dense packed output width
K1 = 16                # padded fan-in for layer-1 MXU matmul (bf16 sublane tile)
NEG = -1e30            # "minus infinity" for masked softmax lanes (finite -> no NaNs)


def _round_up(n, m):
    return ((n + m - 1) // m) * m


def policy_kernel(x_ref, w1_ref, b1_ref, w2_ref, b2_ref, w3_ref, b3_ref,
                  smask_ref, vsel_ref, out_ref, *, inv_lam):
    # ---- layer 1 on the MXU: (TB,16) bf16 @ (16,128) bf16 -> f32 acc ----
    x = x_ref[...].astype(jnp.bfloat16)                    # pad cols are zero
    h1 = jnp.dot(x, w1_ref[...], preferred_element_type=jnp.float32) + b1_ref[...]
    h1 = jnp.maximum(h1, 0.0)

    # ---- layer 2: bf16 inputs, f32 accumulation on MXU ----
    h2 = jnp.dot(h1.astype(jnp.bfloat16), w2_ref[...],
                 preferred_element_type=jnp.float32) + b2_ref[...]
    h2 = jnp.maximum(h2, 0.0)

    # ---- layer 3: W3 pre-padded to 128 output lanes (q in lanes 0:N_ACT,
    #      zeros elsewhere), bf16 on the MXU, f32 accumulation ----
    q_pad = jnp.dot(h2.astype(jnp.bfloat16), w3_ref[...],
                    preferred_element_type=jnp.float32) + b3_ref[...]

    # s = q / lanbda on the real lanes, -1e30 on pad lanes via resident
    # additive mask (mask applied to s, NOT folded into q_pad/b3, so the
    # roll-based packing below never mixes NEG into the probs lanes).
    s = q_pad * inv_lam + smask_ref[...]

    # numerically stable softmax / logsumexp over the (masked) last axis
    m = jnp.max(s, axis=-1, keepdims=True)
    e = jnp.exp(s - m)                                     # pad lanes underflow to 0
    denom = jnp.sum(e, axis=-1, keepdims=True)
    probs_pad = e * pl.reciprocal(denom, approx=True)      # probs in lanes 0:N_ACT
    lse = m + jnp.log(denom)                               # (TB, 1)

    # Pack [probs | q | v | zeros] into one lane-dense slab:
    #   probs -> lanes 0:3, q -> lanes 3:6, v = lse*lanbda -> lane 6
    # (vsel is one-hot at lane 6, pre-scaled by lanbda in the wrapper).
    q_sh = pltpu.roll(q_pad, shift=N_ACT, axis=1)          # q now in lanes 3:6
    out_ref[...] = probs_pad + q_sh + lse * vsel_ref[...]  # single unmasked store


def init_params(key):
    """Deterministic init mimicking nn.Linear defaults: U(-1/sqrt(fan_in), +)."""
    def linear(key, fan_in, fan_out):
        kw, kb = jax.random.split(key)
        bound = 1.0 / math.sqrt(fan_in)
        w = jax.random.uniform(kw, (fan_in, fan_out), jnp.float32, -bound, bound)
        b = jax.random.uniform(kb, (1, fan_out), jnp.float32, -bound, bound)
        return w, b

    k1, k2, k3 = jax.random.split(key, 3)
    w1, b1 = linear(k1, N_OBS, HIDDEN)
    w2, b2 = linear(k2, HIDDEN, HIDDEN)
    w3, b3 = linear(k3, HIDDEN, N_ACT)
    return (w1, b1, w2, b2, w3, b3)


def policy_forward(x, params, lanbda, *, block_b=1024):
    """x: (B, N_OBS) f32 -> (probs (B,N_ACT), q_values (B,N_ACT), v_value (B,))."""
    w1, b1, w2, b2, w3, b3 = params
    B = x.shape[0]
    lam = float(lanbda)
    inv_lam = 1.0 / lam
    block_b = _round_up(max(int(block_b), 8), 8)

    # Kernel-layout parameters: W1 zero-padded to (16,128) bf16, W2 bf16,
    # W3/b3 zero-padded to 128 output lanes (W3 also bf16).
    w1p = jnp.zeros((K1, HIDDEN), jnp.float32).at[:N_OBS, :].set(w1).astype(jnp.bfloat16)
    w2k = w2.astype(jnp.bfloat16)
    w3p = jnp.zeros((HIDDEN, PACK_W), jnp.float32).at[:, :N_ACT].set(w3).astype(jnp.bfloat16)
    b3p = jnp.zeros((1, PACK_W), jnp.float32).at[:, :N_ACT].set(b3)

    # Resident constant vectors replacing in-kernel iota + where:
    #   smask: 0 on lanes 0:N_ACT, NEG elsewhere (added to s).
    #   vsel : lanbda at lane 2*N_ACT, 0 elsewhere (multiplied by lse).
    lane = jnp.arange(PACK_W)
    smask = jnp.where(lane < N_ACT, 0.0, NEG).astype(jnp.float32)[None, :]
    vsel = jnp.where(lane == 2 * N_ACT, lam, 0.0).astype(jnp.float32)[None, :]

    # Batch tiling: TB multiple of 8; guarantee >=2 grid steps when possible so
    # the "parallel" batch axis shards across both v7x TensorCores.
    B8 = _round_up(B, 8)
    TB = min(block_b, B8)
    if B8 >= 16 and B8 // TB < 2:
        TB = min(block_b, _round_up((B8 + 1) // 2, 8))
    Bp = _round_up(B8, TB)

    # x padded: batch up to Bp, feature dim up to K1 (zeros -> no effect on dot).
    xp = jnp.zeros((Bp, K1), jnp.float32).at[:B, :N_OBS].set(x.astype(jnp.float32))

    kernel = functools.partial(policy_kernel, inv_lam=inv_lam)

    packed = pl.pallas_call(
        kernel,
        out_shape=jax.ShapeDtypeStruct((Bp, PACK_W), jnp.float32),
        grid=(Bp // TB,),
        in_specs=[
            pl.BlockSpec((TB, K1), lambda i: (i, 0)),             # x: tiled over batch
            pl.BlockSpec((K1, HIDDEN), lambda i: (0, 0)),         # W1 padded (bf16, resident)
            pl.BlockSpec((1, HIDDEN), lambda i: (0, 0)),          # b1
            pl.BlockSpec((HIDDEN, HIDDEN), lambda i: (0, 0)),     # W2 (bf16, resident)
            pl.BlockSpec((1, HIDDEN), lambda i: (0, 0)),          # b2
            pl.BlockSpec((HIDDEN, PACK_W), lambda i: (0, 0)),     # W3 padded (bf16, resident)
            pl.BlockSpec((1, PACK_W), lambda i: (0, 0)),          # b3 padded
            pl.BlockSpec((1, PACK_W), lambda i: (0, 0)),          # softmax additive mask
            pl.BlockSpec((1, PACK_W), lambda i: (0, 0)),          # v-lane selector (pre-scaled)
        ],
        out_specs=pl.BlockSpec((TB, PACK_W), lambda i: (i, 0)),
        compiler_params=pltpu.CompilerParams(
            dimension_semantics=("parallel",),                     # megacore on v7x
            vmem_limit_bytes=32 * 1024 * 1024),                    # headroom on v5e for big TB
    )(xp, w1p, b1, w2k, b2, w3p, b3p, smask, vsel)

    probs = packed[:B, 0:N_ACT]
    q = packed[:B, N_ACT:2 * N_ACT]
    v = packed[:B, 2 * N_ACT]
    return probs, q, v


def policy_forward_ref(x, params, lanbda):
    """Pure-JAX f32 reference (matches the PyTorch module)."""
    w1, b1, w2, b2, w3, b3 = params
    h1 = jnp.maximum(x @ w1 + b1, 0.0)
    h2 = jnp.maximum(h1 @ w2 + b2, 0.0)
    q = h2 @ w3 + b3
    s = q / lanbda
    probs = jax.nn.softmax(s, axis=-1)
    # module's logsumexp: mean over last dim of (s - log_softmax(s)) == LSE(s)
    v = jnp.mean(s - jax.nn.log_softmax(s, axis=-1), axis=-1) * lanbda
    return probs, q, v


def _check(x, params, lanbda, **kw):
    probs, q, v = policy_forward(x, params, lanbda, **kw)
    jax.block_until_ready((probs, q, v))
    probs_r, q_r, v_r = policy_forward_ref(x, params, lanbda)
    B = x.shape[0]
    assert probs.shape == (B, N_ACT) and q.shape == (B, N_ACT) and v.shape == (B,)
    # bf16 matmuls + approx reciprocal -> compare at ~2e-2 tolerance.
    assert jnp.allclose(probs, probs_r, atol=2e-2, rtol=2e-2)
    assert jnp.allclose(q, q_r, atol=2e-2, rtol=2e-2)
    assert jnp.allclose(v, v_r, atol=2e-2, rtol=2e-2)
    return probs, q, v


if __name__ == "__main__":
    key = jax.random.PRNGKey(0)
    kparams, kx1, kx2 = jax.random.split(key, 3)

    params = init_params(kparams)
    lanbda = 0.5

    # small batch (single grid step)
    x = jax.random.normal(kx1, (8, N_OBS), dtype=jnp.float32)
    _check(x, params, lanbda)

    # default tiling: exercises the ">=2 grid steps" split + batch padding path
    x2 = jax.random.normal(kx2, (200, N_OBS), dtype=jnp.float32)
    _check(x2, params, lanbda)

    # explicit small tile: multi-block grid + batch padding path
    _check(x2, params, lanbda, block_b=64)

    print("KERNEL_OK")
</pallas_src>

<mosaic_0001>
module attributes {stable_mosaic.version = 11 : i64} {
  func.func @policy_kernel(%arg0: i32, %arg1: memref<8x16xf32, #tpu.memory_space<vmem>>, %arg2: memref<16x128xbf16, #tpu.memory_space<vmem>>, %arg3: memref<1x128xf32, #tpu.memory_space<vmem>>, %arg4: memref<128x128xbf16, #tpu.memory_space<vmem>>, %arg5: memref<1x128xf32, #tpu.memory_space<vmem>>, %arg6: memref<128x128xbf16, #tpu.memory_space<vmem>>, %arg7: memref<1x128xf32, #tpu.memory_space<vmem>>, %arg8: memref<1x128xf32, #tpu.memory_space<vmem>>, %arg9: memref<1x128xf32, #tpu.memory_space<vmem>>, %arg10: memref<8x128xf32, #tpu.memory_space<vmem>>) attributes {dimension_semantics = [#tpu.dimension_semantics<parallel>], iteration_bounds = array<i64: 1>, scalar_prefetch = 0 : i64, scratch_operands = 0 : i64, tpu.core_type = #tpu.core_type<tc>, window_params = [{transform_indices = @transform_0, window_bounds = array<i64: 8, 16>}, {pipeline_mode = #tpu.pipeline_mode<synchronous>, transform_indices = @transform_1, window_bounds = array<i64: 16, 128>}, {pipeline_mode = #tpu.pipeline_mode<synchronous>, transform_indices = @transform_2, window_bounds = array<i64: 1, 128>}, {pipeline_mode = #tpu.pipeline_mode<synchronous>, transform_indices = @transform_3, window_bounds = array<i64: 128, 128>}, {pipeline_mode = #tpu.pipeline_mode<synchronous>, transform_indices = @transform_4, window_bounds = array<i64: 1, 128>}, {pipeline_mode = #tpu.pipeline_mode<synchronous>, transform_indices = @transform_5, window_bounds = array<i64: 128, 128>}, {pipeline_mode = #tpu.pipeline_mode<synchronous>, transform_indices = @transform_6, window_bounds = array<i64: 1, 128>}, {pipeline_mode = #tpu.pipeline_mode<synchronous>, transform_indices = @transform_7, window_bounds = array<i64: 1, 128>}, {pipeline_mode = #tpu.pipeline_mode<synchronous>, transform_indices = @transform_8, window_bounds = array<i64: 1, 128>}, {transform_indices = @transform_9, window_bounds = array<i64: 8, 128>}]} {
    %c0 = arith.constant 0 : index
    %c0_0 = arith.constant 0 : index
    %0 = vector.load %arg1[%c0, %c0_0] : memref<8x16xf32, #tpu.memory_space<vmem>>, vector<8x16xf32>
    %1 = arith.truncf %0 : vector<8x16xf32> to vector<8x16xbf16>
    %c0_1 = arith.constant 0 : index
    %c0_2 = arith.constant 0 : index
    %2 = vector.load %arg2[%c0_1, %c0_2] : memref<16x128xbf16, #tpu.memory_space<vmem>>, vector<16x128xbf16>
    %cst = arith.constant dense<0.000000e+00> : vector<8x128xf32>
    %3 = tpu.matmul %1, %2, %cst {dimension_numbers = #tpu.dot_dimension_numbers<[1], [0], [0], [1], [0, 0, 1, 1], [], []>} : vector<8x16xbf16>, vector<16x128xbf16>, vector<8x128xf32> -> vector<8x128xf32>
    %c0_3 = arith.constant 0 : index
    %c0_4 = arith.constant 0 : index
    %4 = vector.load %arg3[%c0_3, %c0_4] : memref<1x128xf32, #tpu.memory_space<vmem>>, vector<1x128xf32>
    %5 = vector.broadcast %4 : vector<1x128xf32> to vector<8x128xf32>
    %6 = arith.addf %3, %5 : vector<8x128xf32>
    %cst_5 = arith.constant 0.000000e+00 : f32
    %7 = vector.broadcast %cst_5 : f32 to vector<8x128xf32>
    %8 = arith.maximumf %6, %7 : vector<8x128xf32>
    %9 = arith.truncf %8 : vector<8x128xf32> to vector<8x128xbf16>
    %c0_6 = arith.constant 0 : index
    %c0_7 = arith.constant 0 : index
    %10 = vector.load %arg4[%c0_6, %c0_7] : memref<128x128xbf16, #tpu.memory_space<vmem>>, vector<128x128xbf16>
    %cst_8 = arith.constant dense<0.000000e+00> : vector<8x128xf32>
    %11 = tpu.matmul %9, %10, %cst_8 {dimension_numbers = #tpu.dot_dimension_numbers<[1], [0], [0], [1], [0, 0, 1, 1], [], []>} : vector<8x128xbf16>, vector<128x128xbf16>, vector<8x128xf32> -> vector<8x128xf32>
    %c0_9 = arith.constant 0 : index
    %c0_10 = arith.constant 0 : index
    %12 = vector.load %arg5[%c0_9, %c0_10] : memref<1x128xf32, #tpu.memory_space<vmem>>, vector<1x128xf32>
    %13 = vector.broadcast %12 : vector<1x128xf32> to vector<8x128xf32>
    %14 = arith.addf %11, %13 : vector<8x128xf32>
    %cst_11 = arith.constant 0.000000e+00 : f32
    %15 = vector.broadcast %cst_11 : f32 to vector<8x128xf32>
    %16 = arith.maximumf %14, %15 : vector<8x128xf32>
    %17 = arith.truncf %16 : vector<8x128xf32> to vector<8x128xbf16>
    %c0_12 = arith.constant 0 : index
    %c0_13 = arith.constant 0 : index
    %18 = vector.load %arg6[%c0_12, %c0_13] : memref<128x128xbf16, #tpu.memory_space<vmem>>, vector<128x128xbf16>
    %cst_14 = arith.constant dense<0.000000e+00> : vector<8x128xf32>
    %19 = tpu.matmul %17, %18, %cst_14 {dimension_numbers = #tpu.dot_dimension_numbers<[1], [0], [0], [1], [0, 0, 1, 1], [], []>} : vector<8x128xbf16>, vector<128x128xbf16>, vector<8x128xf32> -> vector<8x128xf32>
    %c0_15 = arith.constant 0 : index
    %c0_16 = arith.constant 0 : index
    %20 = vector.load %arg7[%c0_15, %c0_16] : memref<1x128xf32, #tpu.memory_space<vmem>>, vector<1x128xf32>
    %21 = vector.broadcast %20 : vector<1x128xf32> to vector<8x128xf32>
    %22 = arith.addf %19, %21 : vector<8x128xf32>
    %cst_17 = arith.constant 2.000000e+00 : f32
    %23 = vector.broadcast %cst_17 : f32 to vector<8x128xf32>
    %24 = arith.mulf %22, %23 : vector<8x128xf32>
    %c0_18 = arith.constant 0 : index
    %c0_19 = arith.constant 0 : index
    %25 = vector.load %arg8[%c0_18, %c0_19] : memref<1x128xf32, #tpu.memory_space<vmem>>, vector<1x128xf32>
    %26 = vector.broadcast %25 : vector<1x128xf32> to vector<8x128xf32>
    %27 = arith.addf %24, %26 : vector<8x128xf32>
    %cst_20 = arith.constant dense<0xFF800000> : vector<8xf32>
    %28 = vector.multi_reduction <maximumf>, %27, %cst_20 [1] : vector<8x128xf32> to vector<8xf32>
    %29 = vector.shape_cast %28 : vector<8xf32> to vector<8x1xf32>
    %30 = vector.broadcast %29 : vector<8x1xf32> to vector<8x128xf32>
    %31 = arith.subf %27, %30 : vector<8x128xf32>
    %32 = math.exp %31 : vector<8x128xf32>
    %cst_21 = arith.constant dense<0.000000e+00> : vector<8xf32>
    %33 = vector.multi_reduction <add>, %32, %cst_21 [1] : vector<8x128xf32> to vector<8xf32>
    %34 = vector.shape_cast %33 : vector<8xf32> to vector<8x1xf32>
    %35 = tpu.reciprocal %34 {approx = true} : vector<8x1xf32> -> vector<8x1xf32>
    %36 = vector.broadcast %35 : vector<8x1xf32> to vector<8x128xf32>
    %37 = arith.mulf %32, %36 : vector<8x128xf32>
    %38 = math.log %34 : vector<8x1xf32>
    %39 = arith.addf %29, %38 : vector<8x1xf32>
    %c3_i32 = arith.constant 3 : i32
    %40 = tpu.dynamic_rotate %22 by %c3_i32 dim 1 : vector<8x128xf32>, i32 -> vector<8x128xf32>
    %41 = arith.addf %37, %40 : vector<8x128xf32>
    %c0_22 = arith.constant 0 : index
    %c0_23 = arith.constant 0 : index
    %42 = vector.load %arg9[%c0_22, %c0_23] : memref<1x128xf32, #tpu.memory_space<vmem>>, vector<1x128xf32>
    %43 = vector.broadcast %39 : vector<8x1xf32> to vector<8x128xf32>
    %44 = vector.broadcast %42 : vector<1x128xf32> to vector<8x128xf32>
    %45 = arith.mulf %43, %44 : vector<8x128xf32>
    %46 = arith.addf %41, %45 : vector<8x128xf32>
    %c0_24 = arith.constant 0 : index
    %c0_25 = arith.constant 0 : index
    %47 = vector.load %arg10[%c0_24, %c0_25] : memref<8x128xf32, #tpu.memory_space<vmem>>, vector<8x128xf32>
    tpu.vector_store %arg10[%c0_24, %c0_25], %46 {strides = array<i32>} : memref<8x128xf32, #tpu.memory_space<vmem>>, vector<8x128xf32>,
    return
  }
  func.func @transform_0(%arg0: i32) -> (i32, i32) {
    %c0_i32 = arith.constant 0 : i32
    %c0_i32_0 = arith.constant 0 : i32
    return %arg0, %c0_i32 : i32, i32
  }
  func.func @transform_1(%arg0: i32) -> (i32, i32) {
    %c0_i32 = arith.constant 0 : i32
    %c0_i32_0 = arith.constant 0 : i32
    %c0_i32_1 = arith.constant 0 : i32
    return %c0_i32, %c0_i32_0 : i32, i32
  }
  func.func @transform_2(%arg0: i32) -> (i32, i32) {
    %c0_i32 = arith.constant 0 : i32
    %c0_i32_0 = arith.constant 0 : i32
    %c0_i32_1 = arith.constant 0 : i32
    return %c0_i32, %c0_i32_0 : i32, i32
  }
  func.func @transform_3(%arg0: i32) -> (i32, i32) {
    %c0_i32 = arith.constant 0 : i32
    %c0_i32_0 = arith.constant 0 : i32
    %c0_i32_1 = arith.constant 0 : i32
    return %c0_i32, %c0_i32_0 : i32, i32
  }
  func.func @transform_4(%arg0: i32) -> (i32, i32) {
    %c0_i32 = arith.constant 0 : i32
    %c0_i32_0 = arith.constant 0 : i32
    %c0_i32_1 = arith.constant 0 : i32
    return %c0_i32, %c0_i32_0 : i32, i32
  }
  func.func @transform_5(%arg0: i32) -> (i32, i32) {
    %c0_i32 = arith.constant 0 : i32
    %c0_i32_0 = arith.constant 0 : i32
    %c0_i32_1 = arith.constant 0 : i32
    return %c0_i32, %c0_i32_0 : i32, i32
  }
  func.func @transform_6(%arg0: i32) -> (i32, i32) {
    %c0_i32 = arith.constant 0 : i32
    %c0_i32_0 = arith.constant 0 : i32
    %c0_i32_1 = arith.constant 0 : i32
    return %c0_i32, %c0_i32_0 : i32, i32
  }
  func.func @transform_7(%arg0: i32) -> (i32, i32) {
    %c0_i32 = arith.constant 0 : i32
    %c0_i32_0 = arith.constant 0 : i32
    %c0_i32_1 = arith.constant 0 : i32
    return %c0_i32, %c0_i32_0 : i32, i32
  }
  func.func @transform_8(%arg0: i32) -> (i32, i32) {
    %c0_i32 = arith.constant 0 : i32
    %c0_i32_0 = arith.constant 0 : i32
    %c0_i32_1 = arith.constant 0 : i32
    return %c0_i32, %c0_i32_0 : i32, i32
  }
  func.func @transform_9(%arg0: i32) -> (i32, i32) {
    %c0_i32 = arith.constant 0 : i32
    %c0_i32_0 = arith.constant 0 : i32
    return %arg0, %c0_i32 : i32, i32
  }
}

</mosaic_0001>

<bundles_post_ra>
// kernel: tpu_custom_call.1
= control target key start
LH: loop header
LB: loop body
LE: loop exit
PB: predicated region body
PF: predicated region fallthrough
CT: control target
= control target key end

     0   :  { %14 = vsyncpa [#allocation3], 0  ;;  %s829_s0 = inlined_call_operand.hbm [shape: f32[8,16], index: 0, kind: input, shape index: {}]   ;;  %s830_s1 = inlined_call_operand.hbm [shape: bf16[16,128], index: 1, kind: input, shape index: {}]   ;;  %s831_s2 = inlined_call_operand.vmem [shape: f32[1,128], index: 2, kind: input, shape index: {}]   ;;  %s832_s3 = inlined_call_operand.hbm [shape: bf16[128,128], index: 3, kind: input, shape index: {}]   ;;  %s833_s4 = inlined_call_operand.vmem [shape: f32[1,128], index: 4, kind: input, shape index: {}]   ;;  %s834_s5 = inlined_call_operand.hbm [shape: bf16[128,128], index: 5, kind: input, shape index: {}]   ;;  %s835_s6 = inlined_call_operand.vmem [shape: f32[1,128], index: 6, kind: input, shape index: {}]   ;;  %s836_s7 = inlined_call_operand.vmem [shape: f32[1,128], index: 7, kind: input, shape index: {}]   ;;  %s837_s8 = inlined_call_operand.vmem [shape: f32[1,128], index: 8, kind: input, shape index: {}]   ;;  %s838_s9 = inlined_call_operand.hbm [shape: f32[8,128], index: 9, kind: output, shape index: {}]  }
   0x1   :  { %15 = vsyncpa [#allocation6], 0 }
   0x2   :  { %16 = vsyncpa [#allocation9], 0 }
   0x3   :  { %17 = vsyncpa [#allocation4], 0  ;;  %s665_s30 = smov [#allocation5]   ;;  %s547_s13 = scalar_lea.hbm %s830_s1, 128 }
   0x4   :  { %s33_s10 = sshll.u32 %s665_s30, 4  ;;  %p548_p0 = scmp.ne.s32.totalorder %s830_s1, %s547_s13  ;;  %s34_s10 = int_to_ptr.vmem [resolvable:$true] %s33_s10 }
   0x5   :  { %p551_p1 = scmp.lt.u32.totalorder %s547_s13, %s830_s1 }
   0x7   :  { %p553_p2 = pnand %p551_p1, %p548_p0 }
   0x9   :  { %556 = shalt.err (!%p553_p2)
}
   0xa   :  { %s557_s18 = scalar_lea.vmem %s34_s10, 128  ;;  %p562_p4 = scmp.lt.s32.totalorder %s34_s10, %s34_s10 }
   0xb   :  { %p558_p3 = scmp.ne.s32.totalorder %s34_s10, %s557_s18  ;;  %p563_p5 = scmp.lt.s32.totalorder %s557_s18, %s557_s18 }
   0xd   :  { %p564_p6 = por %p563_p5, %p562_p4 }
   0xf   :  { %p565_p7 = pnand %p564_p6, %p558_p3 }
  0x11   :  { %568 = shalt.err (!%p565_p7)
}
  0x12   :  { %s666_s19 = smov 64   ;;  %s667_s20 = smov 4  }
  0x13   :  { %39 = dma.hbm_to_vmem [thread:$0]  %s830_s1, 128, %s34_s10, [#allocation6], %s666_s19, %s666_s19, %s667_s20  }
  0x14   :  { %s668_s23 = smov [#allocation2]   ;;  %s669_s25 = smov [#allocation7]  }
  0x15   :  { %s24_s24 = sshll.u32 %s668_s23, 4  ;;  %s47_s26 = sshll.u32 %s669_s25, 4  ;;  %s25_s24 = int_to_ptr.vmem [resolvable:$true] %s24_s24  ;;  %s48_s26 = int_to_ptr.vmem [resolvable:$true] %s47_s26 }
  0x16   :  { %s569_s29 = scalar_lea.hbm %s829_s0, 128 }
  0x17   :  { %p570_p8 = scmp.ne.s32.totalorder %s829_s0, %s569_s29  ;;  %p573_p9 = scmp.lt.u32.totalorder %s569_s29, %s829_s0 }
  0x19   :  { %p575_p10 = pnand %p573_p9, %p570_p8 }
  0x1b   :  { %578 = shalt.err (!%p575_p10)
}
  0x1c   :  { %s579_s1 = scalar_lea.vmem %s25_s24, 128  ;;  %p584_p12 = scmp.lt.s32.totalorder %s25_s24, %s25_s24 }
  0x1d   :  { %p580_p11 = scmp.ne.s32.totalorder %s25_s24, %s579_s1  ;;  %p585_p13 = scmp.lt.s32.totalorder %s579_s1, %s579_s1 }
  0x1f   :  { %p586_p0 = por %p585_p13, %p584_p12 }
  0x21   :  { %p587_p1 = pnand %p586_p0, %p580_p11 }
  0x23   :  { %590 = shalt.err (!%p587_p1)
}
  0x24   :  { %27 = dma.hbm_to_vmem [thread:$0]  %s829_s0, 128, %s25_s24, [#allocation3]  }
  0x25   :  { %s591_s17 = scalar_lea.hbm %s832_s3, 1024 }
  0x26   :  { %p592_p2 = scmp.ne.s32.totalorder %s832_s3, %s591_s17  ;;  %p595_p3 = scmp.lt.u32.totalorder %s591_s17, %s832_s3 }
  0x28   :  { %p597_p4 = pnand %p595_p3, %p592_p2 }
  0x2a   :  { %600 = shalt.err (!%p597_p4)
}
  0x2b   :  { %s601_s25 = scalar_lea.vmem %s48_s26, 1024  ;;  %p606_p6 = scmp.lt.s32.totalorder %s48_s26, %s48_s26 }
  0x2c   :  { %p602_p5 = scmp.ne.s32.totalorder %s48_s26, %s601_s25  ;;  %p607_p7 = scmp.lt.s32.totalorder %s601_s25, %s601_s25 }
  0x2e   :  { %p608_p8 = por %p607_p7, %p606_p6 }
  0x30   :  { %p609_p9 = pnand %p608_p8, %p602_p5 }
  0x32   :  { %612 = shalt.err (!%p609_p9)
}
  0x33   :  { %53 = dma.hbm_to_vmem [thread:$0]  %s832_s3, 1024, %s48_s26, [#allocation6], %s666_s19, %s666_s19, %s667_s20  }
  0x34   :  { %s670_s27 = smov [#allocation8]   ;;  %s613_s11 = scalar_lea.hbm %s834_s5, 1024 }
  0x35   :  { %s61_s28 = sshll.u32 %s670_s27, 4  ;;  %p614_p10 = scmp.ne.s32.totalorder %s834_s5, %s613_s11  ;;  %s62_s28 = int_to_ptr.vmem [resolvable:$true] %s61_s28 }
  0x36   :  { %p617_p11 = scmp.lt.u32.totalorder %s613_s11, %s834_s5 }
  0x38   :  { %p619_p12 = pnand %p617_p11, %p614_p10 }
  0x3a   :  { %622 = shalt.err (!%p619_p12)
}
  0x3b   :  { %s623_s14 = scalar_lea.vmem %s62_s28, 1024  ;;  %p628_p0 = scmp.lt.s32.totalorder %s62_s28, %s62_s28 }
  0x3c   :  { %p624_p13 = scmp.ne.s32.totalorder %s62_s28, %s623_s14  ;;  %p629_p1 = scmp.lt.s32.totalorder %s623_s14, %s623_s14 }
  0x3e   :  { %p630_p2 = por %p629_p1, %p628_p0 }
  0x40   :  { %p631_p3 = pnand %p630_p2, %p624_p13 }
  0x42   :  { %634 = shalt.err (!%p631_p3)
}
  0x43   :  { %67 = dma.hbm_to_vmem [thread:$0]  %s834_s5, 1024, %s62_s28, [#allocation9], %s666_s19, %s666_s19, %s667_s20  }
  0x44   :  { %657 = dma.done.wait [#allocation3], 128  }
  0x45   :  { %658 = vsyncadd [#allocation3], 4294967168 }
  0x46   :  { %659 = dma.done.wait [#allocation6], 1152  }
  0x47   :  { %660 = vsyncadd [#allocation6], 4294966144 }
  0x48   :  { %661 = dma.done.wait [#allocation9], 1024  }
  0x49   :  { %662 = vsyncadd [#allocation9], 4294966272  ;;  %v671_v0 = vmov 0.0   ;;  %vm672_vm0 = vmmov 0   ;;  %v524_v1 = vld [vmem:[#allocation5] sm:$0xff]   ;;  %v87_v2 = vld [vmem:[#allocation2] sm:$0xff] }
  0x4a   :  { %468 = vmatprep.subr.bf16.mxu0 %v671_v0  ;;  %470 = vmatprep.mubr.msk.bf16.mxu0 %vm672_vm0, %v671_v0  ;;  %v88_v3 = vpack.c.bf16 %v87_v2, %v87_v2  ;;  %vm104_vm1 = vcmask 130048   ;;  %v525_v4 = vld [vmem:[#allocation7] sm:$0xff]   ;;  %v526_v5 = vld [vmem:[#allocation7 + $0x8] sm:$0xff]   ;;  %v527_v6 = vld [vmem:[#allocation7 + $0x10] sm:$0xff]   ;;  %s674_s21 = smov [#allocation10]  }
  0x4b   :  { %474 = vmatprep.subr.bf16.mxu1 %v671_v0  ;;  %490 = vmatprep.mubr.msk.bf16.mxu1 %vm672_vm0, %v671_v0  ;;  %v528_v7 = vld [vmem:[#allocation7 + $0x18] sm:$0xff]   ;;  %v529_v8 = vld [vmem:[#allocation7 + $0x20] sm:$0xff]   ;;  %v530_v9 = vld [vmem:[#allocation7 + $0x28] sm:$0xff]   ;;  %s414_s22 = sshll.u32 %s674_s21, 4  ;;  %s415_s22 = int_to_ptr.vmem [resolvable:$true] %s414_s22 }
  0x4c   :  { %469 = vmatpush3.bf16.msra.mxu0 %v524_v1  ;;  %475 = vmatpush3.bf16.msra.mxu1 %v525_v4  ;;  %v531_v10 = vld [vmem:[#allocation7 + $0x30] sm:$0xff]   ;;  %v532_v11 = vld [vmem:[#allocation7 + $0x38] sm:$0xff]   ;;  %v533_v12 = vld [vmem:[#allocation8] sm:$0xff]   ;;  %s635_s23 = scalar_lea.vmem %s415_s22, 128  ;;  %p640_p5 = scmp.lt.s32.totalorder %s415_s22, %s415_s22 }
  0x4d   :  { %494 = vmatprep.subr.bf16.mxu0 %v671_v0  ;;  %476 = vmatprep.subr.bf16.mxu1 %v671_v0  ;;  %v534_v13 = vld [vmem:[#allocation8 + $0x8] sm:$0xff]   ;;  %v535_v14 = vld [vmem:[#allocation8 + $0x10] sm:$0xff]   ;;  %v536_v15 = vld [vmem:[#allocation8 + $0x18] sm:$0xff]   ;;  %p636_p4 = scmp.ne.s32.totalorder %s415_s22, %s635_s23  ;;  %p641_p6 = scmp.lt.s32.totalorder %s635_s23, %s635_s23 }
  0x4e   :  { %v537_v16 = vld [vmem:[#allocation8 + $0x20] sm:$0xff]   ;;  %v538_v17 = vld [vmem:[#allocation8 + $0x28] sm:$0xff]   ;;  %v425_v18 = vld [vmem:[%s831_s2] ss:$0 sm:$0xff] }
  0x4f   :  { %471 = vmatmul.mubr.msk.bf16.vlgmr.msra.gmra.mrb[0].mxu0 %vm104_vm1, %v88_v3  ;;  %v539_v26 = vld [vmem:[#allocation8 + $0x30] sm:$0xff]   ;;  %v540_v27 = vld [vmem:[#allocation8 + $0x38] sm:$0xff]   ;;  %p642_p7 = por %p641_p6, %p640_p5 }
  0x50   :  { %510 = vmatprep.mubr.msk.bf16.mxu0 %vm672_vm0, %v671_v0  ;;  %477 = vmatpush3.bf16.msra.mxu1 %v526_v5  ;;  %v428_v28 = vld [vmem:[%s833_s4] ss:$0 sm:$0xff]  ;;  %s673_s4 = smov 3  }
  0x51   :  { %478 = vmatprep.subr.bf16.mxu1 %v671_v0  ;;  %495 = vmatpush3.bf16.msra.mxu0 %v533_v12  ;;  %v437_v36 = vld [vmem:[%s835_s6] ss:$0 sm:$0xff]  ;;  %p643_p8 = pnand %p642_p7, %p636_p4 }
  0x52   :  { %496 = vmatprep.subr.bf16.mxu0 %v671_v0  ;;  %v446_v41 = vld [vmem:[%s836_s7] ss:$0 sm:$0xff] }
  0x53   :  { %v447_v54 = vld [vmem:[%s837_s8] ss:$0 sm:$0xff] }
  0x54   :  { %479 = vmatpush3.bf16.msra.mxu1 %v527_v6 }
  0x55   :  { %480 = vmatprep.subr.bf16.mxu1 %v671_v0  ;;  %497 = vmatpush3.bf16.msra.mxu0 %v534_v13 }
  0x56   :  { %498 = vmatprep.subr.bf16.mxu0 %v671_v0 }
  0x58   :  { %481 = vmatpush3.bf16.msra.mxu1 %v528_v7 }
  0x59   :  { %482 = vmatprep.subr.bf16.mxu1 %v671_v0  ;;  %499 = vmatpush3.bf16.msra.mxu0 %v535_v14 }
  0x5a   :  { %500 = vmatprep.subr.bf16.mxu0 %v671_v0 }
  0x5c   :  { %483 = vmatpush3.bf16.msra.mxu1 %v529_v8 }
  0x5d   :  { %484 = vmatprep.subr.bf16.mxu1 %v671_v0  ;;  %501 = vmatpush3.bf16.msra.mxu0 %v536_v15 }
  0x5e   :  { %502 = vmatprep.subr.bf16.mxu0 %v671_v0 }
  0x60   :  { %485 = vmatpush3.bf16.msra.mxu1 %v530_v9 }
  0x61   :  { %486 = vmatprep.subr.bf16.mxu1 %v671_v0  ;;  %503 = vmatpush3.bf16.msra.mxu0 %v537_v16 }
  0x62   :  { %504 = vmatprep.subr.bf16.mxu0 %v671_v0 }
  0x64   :  { %487 = vmatpush3.bf16.msra.mxu1 %v531_v10 }
  0x65   :  { %488 = vmatprep.subr.bf16.mxu1 %v671_v0  ;;  %505 = vmatpush3.bf16.msra.mxu0 %v538_v17 }
  0x66   :  { %506 = vmatprep.subr.bf16.mxu0 %v671_v0 }
  0x68   :  { %489 = vmatpush3.bf16.msra.mxu1 %v532_v11 }
  0x69   :  { %507 = vmatpush3.bf16.msra.mxu0 %v539_v26 }
  0x6a   :  { %508 = vmatprep.subr.bf16.mxu0 %v671_v0 }
  0x6d   :  { %509 = vmatpush3.bf16.msra.mxu0 %v540_v27 }
 0x122   :  { %v142_v19 = vpop.f32.mrb[0].mxu0 }
 0x123   :  { %v143_v20 = vadd.f32 %v425_v18, %v142_v19  ;;  %v472_v21 = vpop.f32.mrb[1].mxu0 }
 0x124   :  { %v145_v22 = vpop.f32.mrb[2].mxu0 }
 0x125   :  { %v148_v23 = vmax.f32 %v143_v20, 0.0  ;;  %v473_v24 = vpop.f32.mrb[3].mxu0 }
 0x127   :  { %v149_v25 = vpack.c.bf16 %v148_v23, %v148_v23 }
 0x129   :  { %491 = vmatmul.mubr.bf16.vlgmr.msra.gmra.mrb[0].mxu1 %v149_v25 }
 0x1fc   :  { %v255_v29 = vpop.f32.mrb[0].mxu1 }
 0x1fd   :  { %v256_v30 = vadd.f32 %v428_v28, %v255_v29  ;;  %v492_v31 = vpop.f32.mrb[1].mxu1 }
 0x1fe   :  { %v258_v32 = vpop.f32.mrb[2].mxu1 }
 0x1ff   :  { %v261_v33 = vmax.f32 %v256_v30, 0.0  ;;  %v493_v34 = vpop.f32.mrb[3].mxu1 }
 0x201   :  { %v262_v35 = vpack.c.bf16 %v261_v33, %v261_v33 }
 0x203   :  { %511 = vmatmul.mubr.bf16.vlgmr.msra.gmra.mrb[4].mxu0 %v262_v35 }
 0x2d6   :  { %v368_v37 = vpop.f32.mrb[4].mxu0 }
 0x2d7   :  { %v369_v38 = vadd.f32 %v437_v36, %v368_v37  ;;  %v512_v39 = vpop.f32.mrb[5].mxu0 }
 0x2d8   :  { %v371_v40 = vpop.f32.mrb[6].mxu0 }
 0x2d9   :  { %v374_v42 = vmul.f32 2.0, %v369_v38  ;;  %395 = vrot.lane.b32.xlu1 %v369_v38, %s673_s4  ;;  %v513_v43 = vpop.f32.mrb[7].mxu0 }
 0x2db   :  { %v382_v44 = vadd.f32 %v446_v41, %v374_v42 }
 0x2dd   :  { %383 = vmax.xlane.f32.xlu0 %v382_v44 }
 0x34b   :  { %v396_v56 = vpop.permute.xlu1 %395 }
 0x36a   :  { %v384_v45 = vpop.xlane.xlu0 %383 }
 0x36b   :  { %v385_v46 = vsub.f32 %v382_v44, %v384_v45 }
 0x36d   :  { %v386_v47 = vmul.f32 1.442695, %v385_v46 }
 0x36f   :  { %541 = vpow2.f32 %v386_v47 }
 0x379   :  { %v542_v48 = vpop.eup %541 }
 0x37a   :  { %388 = vadd.xlane.f32.xlu0 %v542_v48 }
 0x407   :  { %v389_v49 = vpop.xlane.xlu0 %388 }
 0x408   :  { %543 = vrcp.f32 %v389_v49 }
 0x409   :  { %545 = vlog2.f32 %v389_v49 }
 0x412   :  { %v544_v50 = vpop.eup %543 }
 0x413   :  { %v546_v51 = vpop.eup %545  ;;  %v391_v53 = vmul.f32 %v544_v50, %v542_v48 }
 0x414   :  { %v393_v52 = vmul.f32 0.6931472, %v546_v51 }
 0x415   :  { %v397_v57 = vadd.f32 %v396_v56, %v391_v53 }
 0x416   :  { %v394_v55 = vadd.f32 %v393_v52, %v384_v45 }
 0x418   :  { %v405_v58 = vmul.f32 %v447_v54, %v394_v55 }
 0x41a   :  { %v406_v59 = vadd.f32 %v405_v58, %v397_v57 }
 0x41c   :  { %407 = vst [vmem:[#allocation10] sm:$0xff] %v406_v59 }
 0x41d   :  { %646 = shalt.err (!%p643_p8)
}
 0x41e   :  { %s647_s8 = scalar_lea.hbm %s838_s9, 128 }
 0x41f   :  { %p648_p9 = scmp.ne.s32.totalorder %s838_s9, %s647_s8  ;;  %p651_p10 = scmp.lt.u32.totalorder %s647_s8, %s838_s9 }
 0x421   :  { %p653_p11 = pnand %p651_p10, %p648_p9 }
 0x423   :  { %656 = shalt.err (!%p653_p11)
}
 0x424   :  { %417 = dma.vmem_to_hbm [thread:$0]  %s415_s22, 128, %s838_s9, [#allocation4]  }
 0x425   :  { %663 = dma.done.wait [#allocation4], 128  }
 0x426   :  { %664 = vsyncadd [#allocation4], 4294967168 }
 0x427   :  { %421 = vsyncpa [#allocation3], 1 }
 0x428   :  { %422 = vsyncpa [#allocation6], 1 }
 0x429   :  { %423 = vsyncpa [#allocation9], 1 }
 0x42a   :  { %424 = vsyncpa [#allocation4], 1 }

</bundles_post_ra>
